<compile_context>
chip_gen: v5e
topology: v5e:2x2
jax: 0.10.0
libtpu: 0.0.40
codegen_flags: <defaults>
</compile_context>

<pallas_src>
import functools

import jax
import jax.numpy as jnp
from jax import lax
from jax.experimental import pallas as pl
from jax.experimental.pallas import tpu as pltpu


def am_loss_kernel(x_ref, proxy_ref, t_ref, mrg_ref, out_ref, *,
                   alphap, alphan, mrgn, delta, lam, nb_classes, batch,
                   use_bf16_matmul):
    x = x_ref[...].astype(jnp.float32)          # (B, D)
    p = proxy_ref[...].astype(jnp.float32)      # (C, D)
    t = t_ref[...]                              # (B, 1) int32 labels
    mrg = mrg_ref[...].astype(jnp.float32)      # (1, C)

    # --- L2 normalization (rsqrt instead of sqrt+div). Clamping the squared
    # norm at 1e-24 == clamping the norm at 1e-12 (F.normalize eps).
    xn = x * lax.rsqrt(jnp.maximum(jnp.sum(x * x, axis=1, keepdims=True), 1e-24))
    pn = p * lax.rsqrt(jnp.maximum(jnp.sum(p * p, axis=1, keepdims=True), 1e-24))

    # --- MXU passes. Optionally feed bf16 operands (native MXU dtype on
    # v5e/v6e/v7x) while accumulating in f32; kept off by default so the
    # alpha=32-amplified exp path still matches the f32 reference at 1e-4.
    if use_bf16_matmul:
        xm = xn.astype(jnp.bfloat16)
        pm = pn.astype(jnp.bfloat16)
    else:
        xm, pm = xn, pn

    dims = (((1,), (1,)), ((), ()))
    cos = lax.dot_general(xm, pm, dims,
                          preferred_element_type=jnp.float32)      # (B, C)
    cos_p = lax.dot_general(pm, pm, dims,
                            preferred_element_type=jnp.float32)    # (C, C)

    # --- positive mask built in-kernel from labels (replaces one-hot input).
    cls = lax.broadcasted_iota(jnp.int32, (batch, nb_classes), 1)
    pos_mask = cls == t                                             # (B, C) bool

    # --- one exp pass over (B, C): select the pos/neg argument first, exp once.
    arg = jnp.where(pos_mask, -alphap * (cos - mrg), alphan * (cos + mrgn))
    e = jnp.exp(arg)
    col_sum = jnp.sum(e, axis=0, keepdims=True)                      # (1, C)
    P_sim_sum = jnp.sum(jnp.where(pos_mask, e, 0.0), axis=0, keepdims=True)
    N_sim_sum = col_sum - P_sim_sum                                  # exact split

    # --- proxy-proxy term. cos_p = pn @ pn^T is exactly symmetric (same
    # operand, same precision on both sides), so summing
    # exp(cos_p - mrg[j] + delta) over axis=0 (sublane reduce, mrg lane-major)
    # equals the reference's row-wise reduce with mrg reshaped to (C, 1).
    r = lax.broadcasted_iota(jnp.int32, (nb_classes, nb_classes), 0)
    c = lax.broadcasted_iota(jnp.int32, (nb_classes, nb_classes), 1)
    sim_proxy = jnp.where(r != c, jnp.exp(cos_p - mrg + delta), 0.0)
    sim_proxy_sum = jnp.sum(sim_proxy, axis=0, keepdims=True)        # (1, C)

    # number of proxies with at least one positive sample in the batch
    col_pos = jnp.sum(pos_mask.astype(jnp.float32), axis=0, keepdims=True)
    num_valid = jnp.maximum(
        jnp.sum((col_pos > 0.0).astype(jnp.float32)), 1.0)

    inv_c = 1.0 / nb_classes
    pos_term = jnp.sum(jnp.log(1.0 + P_sim_sum)) / num_valid
    neg_term = jnp.sum(jnp.log(1.0 + N_sim_sum)) * inv_c
    sim_term = jnp.sum(jnp.log(1.0 + sim_proxy_sum)) * inv_c

    out_ref[0, 0] = pos_term + neg_term + lam * sim_term


def am_loss(X, T, proxies, mrg_list, *,
            mrgn=0.1, alphap=32.0, alphan=32.0, delta=0.1, lam=1.0,
            use_bf16_matmul=False):
    B, D = X.shape
    C, D2 = proxies.shape
    assert D == D2

    kernel = functools.partial(
        am_loss_kernel,
        alphap=float(alphap), alphan=float(alphan), mrgn=float(mrgn),
        delta=float(delta), lam=float(lam), nb_classes=C, batch=B,
        use_bf16_matmul=bool(use_bf16_matmul))

    out = pl.pallas_call(
        kernel,
        out_shape=jax.ShapeDtypeStruct((1, 1), jnp.float32),
        in_specs=[
            pl.BlockSpec(memory_space=pltpu.MemorySpace.VMEM),  # X
            pl.BlockSpec(memory_space=pltpu.MemorySpace.VMEM),  # proxies
            pl.BlockSpec(memory_space=pltpu.MemorySpace.VMEM),  # labels (B, 1)
            pl.BlockSpec(memory_space=pltpu.MemorySpace.VMEM),  # mrg_list (1, C)
        ],
        out_specs=pl.BlockSpec(memory_space=pltpu.MemorySpace.SMEM),
    )(X, proxies,
      T.astype(jnp.int32).reshape(B, 1),
      mrg_list.reshape(1, C).astype(jnp.float32))
    return out[0, 0]


def am_loss_reference(X, T, proxies, mrg_list, *,
                      mrgn=0.1, alphap=32.0, alphan=32.0, delta=0.1, lam=1.0):
    """Pure-JAX reference mirroring the PyTorch forward."""
    C = proxies.shape[0]
    xn = X / jnp.maximum(jnp.linalg.norm(X, axis=1, keepdims=True), 1e-12)
    pn = proxies / jnp.maximum(jnp.linalg.norm(proxies, axis=1, keepdims=True), 1e-12)
    cos = xn @ pn.T
    cos_p = pn @ pn.T
    poh = jax.nn.one_hot(T, C, dtype=jnp.float32)
    pos_exp = jnp.exp(-alphap * (cos - mrg_list[None, :]))
    neg_exp = jnp.exp(alphan * (cos + mrgn))
    P_sim_sum = jnp.where(poh == 1.0, pos_exp, 0.0).sum(axis=0)
    N_sim_sum = jnp.where(poh == 0.0, neg_exp, 0.0).sum(axis=0)
    sim_proxy_sum = (jnp.exp(cos_p - mrg_list[:, None] + delta)
                     * (1.0 - jnp.eye(C))).sum(axis=1)
    num_valid = jnp.sum((poh.sum(axis=0) != 0.0).astype(jnp.float32))
    pos_term = jnp.log(1.0 + P_sim_sum).sum() / num_valid
    neg_term = jnp.log(1.0 + N_sim_sum).sum() / C
    sim_term = jnp.log(1.0 + sim_proxy_sum).sum() / C
    return pos_term + neg_term + lam * sim_term


if __name__ == "__main__":
    # NOTE: these are toy shapes for correctness only — at this size the call is
    # dominated by fixed pallas_call/dispatch overhead; benchmark at production
    # B/C/D (e.g. B=128, C=100..1000, D=512) before tuning further.
    nb_classes = 16
    sz_embed = 32
    batch = 8

    key = jax.random.PRNGKey(0)
    kx, kp, kt = jax.random.split(key, 3)

    # inputs
    X = jax.random.normal(kx, (batch, sz_embed), dtype=jnp.float32)
    T = jax.random.randint(kt, (batch,), 0, nb_classes, dtype=jnp.int32)

    # parameters (deterministic, mirroring __init__):
    # proxies: kaiming_normal_(mode='fan_out') -> std = sqrt(2 / nb_classes)
    proxies = jax.random.normal(kp, (nb_classes, sz_embed), dtype=jnp.float32) \
              * jnp.sqrt(2.0 / nb_classes)
    # mrg_list: ones(nb_classes) * mrg
    mrg = 0.1
    mrg_list = jnp.ones((nb_classes,), dtype=jnp.float32) * mrg

    loss = am_loss(X, T, proxies, mrg_list,
                   mrgn=mrg, alphap=32.0, alphan=32.0, delta=0.1, lam=1.0)
    loss = jax.block_until_ready(loss)

    ref = am_loss_reference(X, T, proxies, mrg_list,
                            mrgn=mrg, alphap=32.0, alphan=32.0,
                            delta=0.1, lam=1.0)
    ref = jax.block_until_ready(ref)

    assert jnp.isfinite(loss), "kernel produced non-finite loss"
    assert jnp.allclose(loss, ref, rtol=1e-4, atol=1e-4), (loss, ref)
    print("KERNEL_OK")
</pallas_src>

<mosaic_0001>
module attributes {stable_mosaic.version = 11 : i64} {
  func.func @am_loss_kernel(%arg0: memref<8x32xf32, #tpu.memory_space<vmem>>, %arg1: memref<16x32xf32, #tpu.memory_space<vmem>>, %arg2: memref<8x1xi32, #tpu.memory_space<vmem>>, %arg3: memref<1x16xf32, #tpu.memory_space<vmem>>, %arg4: memref<1x1xf32, #tpu.memory_space<smem>>) attributes {dimension_semantics = [], scalar_prefetch = 0 : i64, scratch_operands = 0 : i64, tpu.core_type = #tpu.core_type<tc>} {
    %c0 = arith.constant 0 : index
    %c0_0 = arith.constant 0 : index
    %0 = vector.load %arg0[%c0, %c0_0] : memref<8x32xf32, #tpu.memory_space<vmem>>, vector<8x32xf32>
    %c0_1 = arith.constant 0 : index
    %c0_2 = arith.constant 0 : index
    %1 = vector.load %arg1[%c0_1, %c0_2] : memref<16x32xf32, #tpu.memory_space<vmem>>, vector<16x32xf32>
    %c0_3 = arith.constant 0 : index
    %c0_4 = arith.constant 0 : index
    %2 = vector.load %arg2[%c0_3, %c0_4] : memref<8x1xi32, #tpu.memory_space<vmem>>, vector<8x1xi32>
    %c0_5 = arith.constant 0 : index
    %c0_6 = arith.constant 0 : index
    %3 = vector.load %arg3[%c0_5, %c0_6] : memref<1x16xf32, #tpu.memory_space<vmem>>, vector<1x16xf32>
    %4 = arith.mulf %0, %0 : vector<8x32xf32>
    %cst = arith.constant dense<0.000000e+00> : vector<8xf32>
    %5 = vector.multi_reduction <add>, %4, %cst [1] : vector<8x32xf32> to vector<8xf32>
    %6 = vector.shape_cast %5 : vector<8xf32> to vector<8x1xf32>
    %cst_7 = arith.constant 1.000000e-24 : f32
    %7 = vector.broadcast %cst_7 : f32 to vector<8x1xf32>
    %8 = arith.maximumf %6, %7 : vector<8x1xf32>
    %9 = math.rsqrt %8 : vector<8x1xf32>
    %10 = vector.broadcast %9 : vector<8x1xf32> to vector<8x32xf32>
    %11 = arith.mulf %0, %10 : vector<8x32xf32>
    %12 = arith.mulf %1, %1 : vector<16x32xf32>
    %cst_8 = arith.constant dense<0.000000e+00> : vector<16xf32>
    %13 = vector.multi_reduction <add>, %12, %cst_8 [1] : vector<16x32xf32> to vector<16xf32>
    %14 = vector.shape_cast %13 : vector<16xf32> to vector<16x1xf32>
    %cst_9 = arith.constant 1.000000e-24 : f32
    %15 = vector.broadcast %cst_9 : f32 to vector<16x1xf32>
    %16 = arith.maximumf %14, %15 : vector<16x1xf32>
    %17 = math.rsqrt %16 : vector<16x1xf32>
    %18 = vector.broadcast %17 : vector<16x1xf32> to vector<16x32xf32>
    %19 = arith.mulf %1, %18 : vector<16x32xf32>
    %cst_10 = arith.constant dense<0.000000e+00> : vector<8x16xf32>
    %20 = tpu.matmul %11, %19, %cst_10 {dimension_numbers = #tpu.dot_dimension_numbers<[1], [1], [0], [0], [0, 0, 1, 0], [], []>} : vector<8x32xf32>, vector<16x32xf32>, vector<8x16xf32> -> vector<8x16xf32>
    %cst_11 = arith.constant dense<0.000000e+00> : vector<16x16xf32>
    %21 = tpu.matmul %19, %19, %cst_11 {dimension_numbers = #tpu.dot_dimension_numbers<[1], [1], [0], [0], [0, 0, 1, 0], [], []>} : vector<16x32xf32>, vector<16x32xf32>, vector<16x16xf32> -> vector<16x16xf32>
    %22 = tpu.iota {dimensions = array<i32: 1>} : vector<8x16xi32>
    %23 = vector.broadcast %2 : vector<8x1xi32> to vector<8x16xi32>
    %24 = arith.cmpi eq, %22, %23 : vector<8x16xi32>
    %25 = vector.broadcast %3 : vector<1x16xf32> to vector<8x16xf32>
    %26 = arith.subf %20, %25 : vector<8x16xf32>
    %cst_12 = arith.constant -3.200000e+01 : f32
    %27 = vector.broadcast %cst_12 : f32 to vector<8x16xf32>
    %28 = arith.mulf %27, %26 : vector<8x16xf32>
    %cst_13 = arith.constant 1.000000e-01 : f32
    %29 = vector.broadcast %cst_13 : f32 to vector<8x16xf32>
    %30 = arith.addf %20, %29 : vector<8x16xf32>
    %cst_14 = arith.constant 3.200000e+01 : f32
    %31 = vector.broadcast %cst_14 : f32 to vector<8x16xf32>
    %32 = arith.mulf %31, %30 : vector<8x16xf32>
    %33 = arith.select %24, %28, %32 : vector<8x16xi1>, vector<8x16xf32>
    %34 = math.exp %33 : vector<8x16xf32>
    %cst_15 = arith.constant dense<0.000000e+00> : vector<16xf32>
    %35 = vector.multi_reduction <add>, %34, %cst_15 [0] : vector<8x16xf32> to vector<16xf32>
    %36 = vector.shape_cast %35 : vector<16xf32> to vector<1x16xf32>
    %cst_16 = arith.constant 0.000000e+00 : f32
    %37 = vector.broadcast %cst_16 : f32 to vector<8x16xf32>
    %38 = arith.select %24, %34, %37 : vector<8x16xi1>, vector<8x16xf32>
    %cst_17 = arith.constant dense<0.000000e+00> : vector<16xf32>
    %39 = vector.multi_reduction <add>, %38, %cst_17 [0] : vector<8x16xf32> to vector<16xf32>
    %40 = vector.shape_cast %39 : vector<16xf32> to vector<1x16xf32>
    %41 = arith.subf %36, %40 : vector<1x16xf32>
    %42 = tpu.iota {dimensions = array<i32: 0>} : vector<16x16xi32>
    %43 = tpu.iota {dimensions = array<i32: 1>} : vector<16x16xi32>
    %44 = arith.cmpi ne, %42, %43 : vector<16x16xi32>
    %45 = vector.broadcast %3 : vector<1x16xf32> to vector<16x16xf32>
    %46 = arith.subf %21, %45 : vector<16x16xf32>
    %cst_18 = arith.constant 1.000000e-01 : f32
    %47 = vector.broadcast %cst_18 : f32 to vector<16x16xf32>
    %48 = arith.addf %46, %47 : vector<16x16xf32>
    %49 = math.exp %48 : vector<16x16xf32>
    %cst_19 = arith.constant 0.000000e+00 : f32
    %50 = vector.broadcast %cst_19 : f32 to vector<16x16xf32>
    %51 = arith.select %44, %49, %50 : vector<16x16xi1>, vector<16x16xf32>
    %cst_20 = arith.constant dense<0.000000e+00> : vector<16xf32>
    %52 = vector.multi_reduction <add>, %51, %cst_20 [0] : vector<16x16xf32> to vector<16xf32>
    %53 = vector.shape_cast %52 : vector<16xf32> to vector<1x16xf32>
    %54 = arith.extui %24 : vector<8x16xi1> to vector<8x16xi32>
    %55 = arith.sitofp %54 : vector<8x16xi32> to vector<8x16xf32>
    %cst_21 = arith.constant dense<0.000000e+00> : vector<16xf32>
    %56 = vector.multi_reduction <add>, %55, %cst_21 [0] : vector<8x16xf32> to vector<16xf32>
    %57 = vector.shape_cast %56 : vector<16xf32> to vector<1x16xf32>
    %cst_22 = arith.constant 0.000000e+00 : f32
    %58 = vector.broadcast %cst_22 : f32 to vector<1x16xf32>
    %59 = arith.cmpf ogt, %57, %58 : vector<1x16xf32>
    %60 = arith.extui %59 : vector<1x16xi1> to vector<1x16xi32>
    %61 = arith.sitofp %60 : vector<1x16xi32> to vector<1x16xf32>
    %62 = vector.shape_cast %61 : vector<1x16xf32> to vector<1x1x16xf32>
    %cst_23 = arith.constant dense<0.000000e+00> : vector<1xf32>
    %63 = vector.multi_reduction <add>, %62, %cst_23 [1, 2] : vector<1x1x16xf32> to vector<1xf32>
    %64 = vector.shape_cast %63 : vector<1xf32> to vector<1x1x1xf32>
    %65 = vector.extract %64[0, 0, 0] : f32 from vector<1x1x1xf32>
    %cst_24 = arith.constant 1.000000e+00 : f32
    %66 = arith.maximumf %65, %cst_24 : f32
    %cst_25 = arith.constant 1.000000e+00 : f32
    %67 = vector.broadcast %cst_25 : f32 to vector<1x16xf32>
    %68 = arith.addf %67, %40 : vector<1x16xf32>
    %69 = math.log %68 : vector<1x16xf32>
    %70 = vector.shape_cast %69 : vector<1x16xf32> to vector<1x1x16xf32>
    %cst_26 = arith.constant dense<0.000000e+00> : vector<1xf32>
    %71 = vector.multi_reduction <add>, %70, %cst_26 [1, 2] : vector<1x1x16xf32> to vector<1xf32>
    %72 = vector.shape_cast %71 : vector<1xf32> to vector<1x1x1xf32>
    %73 = vector.extract %72[0, 0, 0] : f32 from vector<1x1x1xf32>
    %74 = arith.divf %73, %66 : f32
    %cst_27 = arith.constant 1.000000e+00 : f32
    %75 = vector.broadcast %cst_27 : f32 to vector<1x16xf32>
    %76 = arith.addf %75, %41 : vector<1x16xf32>
    %77 = math.log %76 : vector<1x16xf32>
    %78 = vector.shape_cast %77 : vector<1x16xf32> to vector<1x1x16xf32>
    %cst_28 = arith.constant dense<0.000000e+00> : vector<1xf32>
    %79 = vector.multi_reduction <add>, %78, %cst_28 [1, 2] : vector<1x1x16xf32> to vector<1xf32>
    %80 = vector.shape_cast %79 : vector<1xf32> to vector<1x1x1xf32>
    %81 = vector.extract %80[0, 0, 0] : f32 from vector<1x1x1xf32>
    %cst_29 = arith.constant 6.250000e-02 : f32
    %82 = arith.mulf %81, %cst_29 : f32
    %cst_30 = arith.constant 1.000000e+00 : f32
    %83 = vector.broadcast %cst_30 : f32 to vector<1x16xf32>
    %84 = arith.addf %83, %53 : vector<1x16xf32>
    %85 = math.log %84 : vector<1x16xf32>
    %86 = vector.shape_cast %85 : vector<1x16xf32> to vector<1x1x16xf32>
    %cst_31 = arith.constant dense<0.000000e+00> : vector<1xf32>
    %87 = vector.multi_reduction <add>, %86, %cst_31 [1, 2] : vector<1x1x16xf32> to vector<1xf32>
    %88 = vector.shape_cast %87 : vector<1xf32> to vector<1x1x1xf32>
    %89 = vector.extract %88[0, 0, 0] : f32 from vector<1x1x1xf32>
    %cst_32 = arith.constant 6.250000e-02 : f32
    %90 = arith.mulf %89, %cst_32 : f32
    %91 = arith.addf %74, %82 : f32
    %cst_33 = arith.constant 1.000000e+00 : f32
    %92 = arith.mulf %cst_33, %90 : f32
    %93 = arith.addf %91, %92 : f32
    %c0_34 = arith.constant 0 : index
    %c0_35 = arith.constant 0 : index
    %94 = memref.load %arg4[%c0_34, %c0_35] : memref<1x1xf32, #tpu.memory_space<smem>>
    memref.store %93, %arg4[%c0_34, %c0_35] : memref<1x1xf32, #tpu.memory_space<smem>>
    return
  }
}

</mosaic_0001>

<bundles_post_ra>
// kernel: tpu_custom_call.1
= control target key start
LH: loop header
LB: loop body
LE: loop exit
PB: predicated region body
PF: predicated region fallthrough
CT: control target
= control target key end

     0   :  { %9 = vsyncpa [#allocation3], 0  ;;  %s492_s0 = inlined_call_operand.vmem [shape: f32[8,32], index: 0, kind: input, shape index: {}]   ;;  %s493_s1 = inlined_call_operand.hbm [shape: f32[16,32], index: 1, kind: input, shape index: {}]   ;;  %s494_s2 = inlined_call_operand.vmem [shape: s32[8,1], index: 2, kind: input, shape index: {}]   ;;  %s495_s3 = inlined_call_operand.vmem [shape: f32[1,16], index: 3, kind: input, shape index: {}]   ;;  %s496_s4 = inlined_call_operand.hbm [shape: f32[1,1], index: 4, kind: output, shape index: {}]  }
   0x1   :  { %10 = vsyncpa [#allocation4], 0  ;;  %s17_s17 = sshll.u32 %s493_s1, 4  ;;  %s390_s18 = smov [#allocation2]   ;;  %s18_s17 = int_to_ptr.hbm [resolvable:$true] %s17_s17 }
   0x2   :  { %s19_s19 = sshll.u32 %s390_s18, 4  ;;  %s391_s20 = smov 128   ;;  %s20_s19 = int_to_ptr.vmem [resolvable:$true] %s19_s19 }
   0x3   :  { %s392_s21 = smov 8  }
   0x4   :  { %25 = dma.hbm_to_vmem [thread:$0]  %s18_s17, 256, %s20_s19, [#allocation3], %s391_s20, %s391_s20, %s392_s21  }
   0x5   :  { %386 = dma.done.wait [#allocation3], 256  }
   0x6   :  { %387 = vsyncadd [#allocation3], 4294967040  ;;  %v393_v0 = vmov 0   ;;  %v36_v1 = vld [vmem:[#allocation2 + $0x8] sm:$0xff]  ;;  %vm40_vm0 = vcmask 261120   ;;  %v428_v2 = vld [vmem:[%s492_s0] sm:$0xff]  ;;  %v140_v15 = vlaneseq }
   0x7   :  { %327 = vset.pattern.permute.xlu1 %v393_v0  ;;  %328 = vset.pattern.permute.xlu0 %v393_v0  ;;  %v57_v3 = vmul.f32 %v36_v1, %v36_v1  ;;  %v39_v4 = vmul.f32 %v428_v2, %v428_v2  ;;  %v432_v5 = vld [vmem:[#allocation2] sm:$0xff]  ;;  %vm156_vm7 = vcmask 130048   ;;  %v394_v42 = vmov 0.0   ;;  %s395_s25 = smov 1.0   ;;  %s288_s9 = sshll.u32 %s496_s4, 4  ;;  %s289_s9 = int_to_ptr.hbm [resolvable:$true] %s288_s9 }
   0x8   :  { %v56_v8 = vmul.f32 %v432_v5, %v432_v5  ;;  %v37_v10 = vld [vmem:[%s494_s2] sm:$0xff]  ;;  %v442_v16 = vand.u32 127, %v140_v15  ;;  %v444_v17 = vshrl.u32 %v140_v15, 7  ;;  %vm209_vm14 = vcmask 122880   ;;  %s396_s13 = smov [#allocation5]  }
   0x9   :  { %v61_v6 = vsel %vm40_vm0, %v57_v3, 0.0  ;;  %v41_v7 = vsel %vm40_vm0, %v39_v4, 0.0  ;;  %v329_v57 = vld [vmem:[%s495_s3] ss:$0 sm:$0xff] }
   0xa   :  { %62 = vadd.xlane.f32.xlu0 %v61_v6  ;;  %42 = vadd.xlane.f32.xlu1 %v41_v7  ;;  %v58_v9 = vsel %vm40_vm0, %v56_v8, 0.0  ;;  %v447_v18 = vadd.s32 8, %v444_v17  ;;  %vm176_vm1 = vcmp.ne.s32.totalorder %v444_v17, %v442_v16 }
   0xc   :  { %vm177_vm2 = vcmp.ne.s32.totalorder %v447_v18, %v442_v16 }
  0x12   :  { %59 = vadd.xlane.f32.xlu0 %v58_v9 }
  0x23   :  { %143 = vperm.xlu1 %327, %v37_v10  }
  0x7d   :  { %v63_v11 = vpop.xlane.xlu0 %62  ;;  %v43_v12 = vpop.xlane.xlu1 %42 }
  0x7e   :  { %v65_v13 = vmax.f32 %v63_v11, 1e-24  ;;  %v44_v14 = vmax.f32 %v43_v12, 1e-24 }
  0x80   :  { %330 = vrsqrt.f32 %v65_v13  ;;  %vm82_vm4 = vweird.f32 %v65_v13  ;;  %vm51_vm8 = vweird.f32 %v44_v14 }
  0x81   :  { %332 = vrsqrt.f32 %v44_v14 }
  0x85   :  { %v60_v19 = vpop.xlane.xlu0 %59 }
  0x86   :  { %v331_v20 = vpop.eup %330  ;;  %v64_v21 = vmax.f32 %v60_v19, 1e-24 }
  0x87   :  { %v333_v22 = vpop.eup %332  ;;  %v77_v23 = vmul.f32 %v331_v20, %v65_v13  ;;  %vm83_vm3 = vweird.f32 %v331_v20 }
  0x88   :  { %v46_v24 = vmul.f32 %v333_v22, %v44_v14  ;;  %334 = vrsqrt.f32 %v64_v21  ;;  %vm84_vm5 = vmor %vm82_vm4, %vm83_vm3  ;;  %vm52_vm9 = vweird.f32 %v333_v22  ;;  %vm72_vm11 = vweird.f32 %v64_v21 }
  0x89   :  { %v78_v25 = vmul.f32 %v331_v20, %v77_v23  ;;  %vm53_vm13 = vmor %vm51_vm8, %vm52_vm9 }
  0x8a   :  { %v47_v26 = vmul.f32 %v333_v22, %v46_v24 }
  0x8b   :  { %v79_v27 = vmul.f32 0.5, %v78_v25 }
  0x8c   :  { %v48_v30 = vmul.f32 0.5, %v47_v26 }
  0x8d   :  { %v80_v28 = vsub.f32 1.5, %v79_v27 }
  0x8e   :  { %v335_v29 = vpop.eup %334  ;;  %v49_v35 = vsub.f32 1.5, %v48_v30 }
  0x8f   :  { %v81_v31 = vmul.f32 %v331_v20, %v80_v28  ;;  %v67_v32 = vmul.f32 %v335_v29, %v64_v21  ;;  %vm73_vm6 = vweird.f32 %v335_v29 }
  0x90   :  { %v50_v40 = vmul.f32 %v333_v22, %v49_v35  ;;  %vm74_vm12 = vmor %vm72_vm11, %vm73_vm6 }
  0x91   :  { %v85_v33 = vsel %vm84_vm5, %v331_v20, %v81_v31  ;;  %v68_v34 = vmul.f32 %v335_v29, %v67_v32 }
  0x92   :  { %v87_v36 = vmul.f32 %v85_v33, %v36_v1  ;;  %v54_v48 = vsel %vm53_vm13, %v333_v22, %v50_v40 }
  0x93   :  { %v69_v37 = vmul.f32 0.5, %v68_v34  ;;  %v55_v50 = vmul.f32 %v54_v48, %v428_v2 }
  0x94   :  { %299 = vmatpush.xpose.msk.msra.mxu0 %vm40_vm0, %v87_v36  ;;  %302 = vmatpush.xpose.msk.msra.mxu1 %vm40_vm0, %v87_v36 }
  0x95   :  { %v70_v38 = vsub.f32 1.5, %v69_v37  ;;  %308 = vmatpush.xpose.msk.msra.mxu2 %vm40_vm0, %v87_v36  ;;  %v144_v39 = vpop.permute.xlu1 %143 }
  0x96   :  { %vm145_vm10 = vcmp.eq.s32.totalorder %v442_v16, %v144_v39 }
  0x97   :  { %v71_v41 = vmul.f32 %v335_v29, %v70_v38  ;;  %v306_v43 = vsel %vm145_vm10, 1.0, %v394_v42 }
  0x98   :  { %v199_v44 = vsel %vm156_vm7, %v306_v43, 0.0 }
  0x99   :  { %v75_v45 = vsel %vm74_vm12, %v335_v29, %v71_v41  ;;  %v200_v46 = vrot.slane %v199_v44, 4 }
  0x9a   :  { %v86_v47 = vmul.f32 %v75_v45, %v432_v5 }
  0x9b   :  { %v201_v49 = vadd.f32 %v200_v46, %v199_v44 }
  0x9c   :  { %300 = vmatpush.xpose.msk.msra.mxu0 %vm40_vm0, %v86_v47  ;;  %303 = vmatpush.xpose.msk.msra.mxu1 %vm40_vm0, %v86_v47 }
  0x9d   :  { %309 = vmatpush.xpose.msk.msra.mxu2 %vm40_vm0, %v86_v47  ;;  %v202_v51 = vrot.slane %v201_v49, 2 }
  0x9f   :  { %301 = vmatmul.msk.f32.vlgmr.msra.gmra.mxu0 %vm40_vm0, %v55_v50  ;;  %304 = vmatmul.msk.f32.vlgmr.msra.gmra.mxu1 %vm40_vm0, %v86_v47  ;;  %v203_v52 = vadd.f32 %v202_v51, %v201_v49 }
  0xa0   :  { %305 = vmatmul.msk.f32.vlgmr.msra.gmra.mxu2 %vm40_vm0, %v87_v36 }
  0xa1   :  { %v204_v53 = vrot.slane %v203_v52, 1 }
  0xa3   :  { %v205_v54 = vadd.f32 %v204_v53, %v203_v52 }
  0xa5   :  { %vm206_vm15 = vcmp.gt.f32.partialorder %v205_v54, 0.0 }
  0xa6   :  { %v307_v55 = vsel %vm206_vm15, 1.0, %v394_v42 }
  0xa7   :  { %v210_v56 = vsel %vm209_vm14, %v307_v55, 0.0 }
  0xa8   :  { %211 = vadd.xlane.f32.xlu2 %v210_v56 }
 0x11b   :  { %v212_v19 = vpop.xlane.xlu2 %211 }
 0x11c   :  { %v114_v58 = vpop.f32.mrf.mxu0  ;;  %v134_v59 = vpop.f32.mrf.mxu1  ;;  %v213_v21 = vrot.slane %v212_v19, 4 }
 0x11d   :  { %v149_v60 = vsub.f32 %v114_v58, %v329_v57  ;;  %v151_v61 = vadd.f32 0.1, %v114_v58  ;;  %v178_v62 = vsub.f32 %v134_v59, %v329_v57 }
 0x11e   :  { %v214_v26 = vadd.f32 %v213_v21, %v212_v19 }
 0x11f   :  { %v150_v63 = vmul.f32 -32.0, %v149_v60  ;;  %v152_v0 = vmul.f32 32.0, %v151_v61  ;;  %v180_v1 = vadd.f32 0.1, %v178_v62 }
 0x120   :  { %v215_v32 = vrot.slane %v214_v26, 2 }
 0x121   :  { %v153_v2 = vsel %vm145_vm10, %v150_v63, %v152_v0  ;;  %v182_v4 = vmul.f32 1.442695, %v180_v1 }
 0x122   :  { %v154_v3 = vmul.f32 1.442695, %v153_v2  ;;  %v216_v17 = vadd.f32 %v215_v32, %v214_v26 }
 0x123   :  { %v137_v5 = vpop.f32.mrf.mxu2 }
 0x124   :  { %336 = vpow2.f32 %v154_v3  ;;  %v179_v6 = vsub.f32 %v137_v5, %v329_v57  ;;  %v217_v39 = vrot.slane %v216_v17, 1 }
 0x125   :  { %338 = vpow2.f32 %v182_v4 }
 0x126   :  { %v181_v7 = vadd.f32 0.1, %v179_v6  ;;  %v218_v42 = vadd.f32 %v217_v39, %v216_v17 }
 0x128   :  { %v184_v8 = vmul.f32 1.442695, %v181_v7  ;;  %310 = vpush %v218_v42 }
 0x12a   :  { %v337_v9 = vpop.eup %336  ;;  %340 = vpow2.f32 %v184_v8 }
 0x12b   :  { %v164_v10 = vsel %vm145_vm10, %v337_v9, 0.0  ;;  %v157_v11 = vsel %vm156_vm7, %v337_v9, 0.0  ;;  %v339_v12 = vpop.eup %338 }
 0x12c   :  { %v165_v13 = vsel %vm156_vm7, %v164_v10, 0.0  ;;  %v158_v14 = vrot.slane %v157_v11, 4  ;;  %v186_v22 = vsel %vm176_vm1, %v339_v12, 0.0 }
 0x12d   :  { %v166_v15 = vrot.slane %v165_v13, 4  ;;  %v188_v29 = vsel %vm156_vm7, %v186_v22, 0.0 }
 0x12e   :  { %v159_v20 = vadd.f32 %v158_v14, %v157_v11 }
 0x12f   :  { %v167_v23 = vadd.f32 %v166_v15, %v165_v13 }
 0x130   :  { %v341_v24 = vpop.eup %340  ;;  %v160_v25 = vrot.slane %v159_v20, 2 }
 0x131   :  { %v187_v27 = vsel %vm177_vm2, %v341_v24, 0.0  ;;  %v168_v28 = vrot.slane %v167_v23, 2 }
 0x132   :  { %v189_v30 = vsel %vm156_vm7, %v187_v27, 0.0  ;;  %v161_v31 = vadd.f32 %v160_v25, %v159_v20 }
 0x133   :  { %v190_v33 = vadd.f32 %v189_v30, %v188_v29  ;;  %v169_v34 = vadd.f32 %v168_v28, %v167_v23 }
 0x134   :  { %v162_v35 = vrot.slane %v161_v31, 1 }
 0x135   :  { %v170_v36 = vrot.slane %v169_v34, 1  ;;  %v191_v37 = vrot.slane %v190_v33, 4 }
 0x136   :  { %v163_v38 = vadd.f32 %v162_v35, %v161_v31 }
 0x137   :  { %v171_v40 = vadd.f32 %v170_v36, %v169_v34  ;;  %v192_v41 = vadd.f32 %v191_v37, %v190_v33 }
 0x139   :  { %v221_v16 = vadd.f32 1.0, %v171_v40  ;;  %v172_v18 = vsub.f32 %v163_v38, %v171_v40  ;;  %v193_v43 = vrot.slane %v192_v41, 2 }
 0x13b   :  { %342 = vlog2.f32 %v221_v16  ;;  %v251_v44 = vadd.f32 1.0, %v172_v18  ;;  %v194_v45 = vadd.f32 %v193_v43, %v192_v41 }
 0x13d   :  { %344 = vlog2.f32 %v251_v44  ;;  %v195_v46 = vrot.slane %v194_v45, 1 }
 0x13f   :  { %v196_v47 = vadd.f32 %v195_v46, %v194_v45 }
 0x141   :  { %v343_v48 = vpop.eup %342  ;;  %v265_v49 = vadd.f32 1.0, %v196_v47 }
 0x142   :  { %v223_v50 = vmul.f32 0.6931472, %v343_v48 }
 0x143   :  { %v345_v51 = vpop.eup %344  ;;  %346 = vlog2.f32 %v265_v49 }
 0x144   :  { %v224_v52 = vsel %vm209_vm14, %v223_v50, 0.0  ;;  %v253_v53 = vmul.f32 0.6931472, %v345_v51 }
 0x145   :  { %225 = vadd.xlane.f32.xlu2 %v224_v52 }
 0x146   :  { %v254_v54 = vsel %vm209_vm14, %v253_v53, 0.0 }
 0x147   :  { %255 = vadd.xlane.f32.xlu0 %v254_v54 }
 0x149   :  { %v347_v55 = vpop.eup %346 }
 0x14a   :  { %v267_v56 = vmul.f32 0.6931472, %v347_v55 }
 0x14c   :  { %v268_v57 = vsel %vm209_vm14, %v267_v56, 0.0 }
 0x14d   :  { %269 = vadd.xlane.f32.xlu2 %v268_v57 }
 0x159   :  { %s311_s3 = spop %310 }
 0x15a   :  { %s220_s26 = smax.f32 %s395_s25, %s311_s3 }
 0x15b   :  { %v234_v58 = vstv %s220_s26 }
 0x15c   :  { %348 = vrcp.f32 %v234_v58  ;;  %vm240_vm0 = vweird.f32 %v234_v58  ;;  %v246_v6 = vand.u32 2147483648, %v234_v58  ;;  %v244_v8 = vand.u32 2147483647, %v234_v58 }
 0x15e   :  { %v247_v15 = vor.u32 1.1754944e-38, %v246_v6  ;;  %vm245_vm3 = vcmp.eq.f32.partialorder %v244_v8, 8.507059e+37 }
 0x162   :  { %v349_v59 = vpop.eup %348 }
 0x163   :  { %v236_v60 = vmul.f32 %v349_v59, %v234_v58  ;;  %vm241_vm1 = vweird.f32 %v349_v59 }
 0x164   :  { %vm242_vm2 = vmor %vm240_vm0, %vm241_vm1 }
 0x165   :  { %v237_v61 = vsub.f32 1.0, %v236_v60 }
 0x167   :  { %v238_v1 = vmul.f32 %v349_v59, %v237_v61 }
 0x169   :  { %v239_v7 = vadd.f32 %v349_v59, %v238_v1 }
 0x16b   :  { %v243_v19 = vsel %vm242_vm2, %v349_v59, %v239_v7 }
 0x16c   :  { %v248_v24 = vsel %vm245_vm3, %v247_v15, %v243_v19 }
 0x1b8   :  { %v226_v62 = vpop.xlane.xlu2 %225 }
 0x1b9   :  { %v227_v63 = vrot.slane %v226_v62, 4 }
 0x1ba   :  { %v256_v0 = vpop.xlane.xlu0 %255 }
 0x1bb   :  { %v228_v2 = vadd.f32 %v227_v63, %v226_v62  ;;  %v257_v3 = vrot.slane %v256_v0, 4 }
 0x1bd   :  { %v229_v4 = vrot.slane %v228_v2, 2  ;;  %v258_v5 = vadd.f32 %v257_v3, %v256_v0 }
 0x1bf   :  { %v259_v9 = vrot.slane %v258_v5, 2  ;;  %v230_v10 = vadd.f32 %v229_v4, %v228_v2 }
 0x1c0   :  { %v270_v11 = vpop.xlane.xlu2 %269 }
 0x1c1   :  { %v260_v12 = vadd.f32 %v259_v9, %v258_v5  ;;  %v271_v13 = vrot.slane %v270_v11, 4  ;;  %v231_v14 = vrot.slane %v230_v10, 1 }
 0x1c3   :  { %v272_v20 = vadd.f32 %v271_v13, %v270_v11  ;;  %v232_v21 = vadd.f32 %v231_v14, %v230_v10  ;;  %v261_v22 = vrot.slane %v260_v12, 1 }
 0x1c5   :  { %v273_v23 = vrot.slane %v272_v20, 2  ;;  %312 = vpush %v232_v21  ;;  %v262_v25 = vadd.f32 %v261_v22, %v260_v12 }
 0x1c6   :  { %314 = vpush %v248_v24 }
 0x1c7   :  { %v274_v26 = vadd.f32 %v273_v23, %v272_v20  ;;  %316 = vpush %v262_v25 }
 0x1c9   :  { %v275_v27 = vrot.slane %v274_v26, 1 }
 0x1cb   :  { %v276_v28 = vadd.f32 %v275_v27, %v274_v26 }
 0x1cd   :  { %318 = vpush %v276_v28 }
 0x1f6   :  { %s313_s27 = spop %312 }
 0x1f7   :  { %s315_s28 = spop %314 }
 0x1f8   :  { %s317_s29 = spop %316  ;;  %s250_s5 = smul.f32 %s315_s28, %s313_s27 }
 0x1f9   :  { %s264_s30 = smul.f32 0.0625, %s317_s29 }
 0x1fb   :  { %s279_s10 = sadd.f32 %s264_s30, %s250_s5 }
 0x1fe   :  { %s319_s6 = spop %318 }
 0x1ff   :  { %s278_s11 = smul.f32 0.0625, %s319_s6 }
 0x201   :  { %s280_s12 = sadd.f32 %s279_s10, %s278_s11 }
 0x203   :  { %282 = sst [smem:[#allocation5]] %s280_s12 }
 0x204   :  { %291 = dma.smem_to_hbm %s396_s13, 16, %s289_s9, [#allocation4]  }
 0x205   :  { %388 = dma.done.wait [#allocation4], 16  }
 0x206   :  { %389 = vsyncadd [#allocation4], 4294967280 }
 0x207   :  { %296 = sfence }
 0x208   :  { %297 = vsyncpa [#allocation3], 1 }
 0x209   :  { %298 = vsyncpa [#allocation4], 1 }

</bundles_post_ra>
